<compile_context>
chip_gen: v7x
topology: tpu7x:2x2x1
jax: 0.10.0
libtpu: 0.0.40
codegen_flags: <defaults>
</compile_context>

<pallas_src>
import functools

import jax
import jax.numpy as jnp
from jax.experimental import pallas as pl
from jax.experimental.pallas import tpu as pltpu

_LANE = 128
_BF16_SUBLANE = 16                 # bf16 sublane packing -> (16, 128) tile unit
_UNIT = _BF16_SUBLANE * _LANE      # 2048 lanes: padding / tiling granularity

_IN = 6      # fc1 in_features
_HID = 10    # fc1 out_features / fc2 in_features

_DEFAULT_TILE_LANES = 65536        # ~0.77 MiB bf16 per x buffer (sb_tile = 512)


def _round_up(x, m):
    return ((x + m - 1) // m) * m


def _mlp_kernel(x_ref, w1_ref, b1_ref, w2_ref, b2_ref, o_ref, *, compute_dtype):
    # x_ref : [6, SB, 128] bf16  (feature, sublane-chunk, lane) -- batch on lanes
    # w1_ref: [6, 10] SMEM f32, b1_ref: [10] SMEM, w2_ref: [10] SMEM, b2_ref: [1] SMEM
    # o_ref : [SB, 128] f32
    cd = compute_dtype
    # Hoist the six feature-row loads out of the hidden-unit loop: 6 vector
    # loads total (instead of 60), reused by every broadcast-MAC below.
    xs = [x_ref[k].astype(cd) for k in range(_IN)]

    y = None
    for j in range(_HID):
        # h_j = relu(b1[j] + sum_k w1[k, j] * x[k, :])  -- VPU broadcast-MACs
        h = xs[0] * w1_ref[0, j].astype(cd)
        for k in range(1, _IN):
            h = h + xs[k] * w1_ref[k, j].astype(cd)
        h = jnp.maximum(h + b1_ref[j].astype(cd), 0.0)
        t = h * w2_ref[j].astype(cd)
        y = t if y is None else y + t

    # f32 epilogue: output bias + sigmoid.  exp and the approximate reciprocal
    # both run on the EUP (separate bundle slot, essentially free here).
    # Padded lanes carry x = 0 and produce finite values that are sliced off
    # in the wrapper; there is no cross-lane reduction, so they stay contained.
    y = y.astype(jnp.float32) + b2_ref[0]
    o_ref[...] = pl.reciprocal(1.0 + jnp.exp(-y), approx=True).astype(o_ref.dtype)
    # NOTE: use an exact reciprocal / jax.nn.sigmoid here if bit-closer parity
    # with torch.sigmoid is ever required (approx is ~1e-3 accurate).


def _plan(batch, tile_lanes):
    """Choose (n_tiles, tile_lanes, padded_batch), all multiples of _UNIT."""
    bp_unit = _round_up(max(batch, 1), _UNIT)
    want = max(_UNIT, _round_up(tile_lanes, _UNIT))
    n_tiles = pl.cdiv(bp_unit, want)
    # v7x megacore: keep >=2 grid steps (dimension_semantics=("parallel",))
    # so both TensorCores get work, as long as the batch spans >=2 units.
    if n_tiles < 2 and bp_unit >= 2 * _UNIT:
        n_tiles = 2
    tile = _round_up(pl.cdiv(bp_unit, n_tiles), _UNIT)
    return n_tiles, tile, n_tiles * tile


def _pallas_mlp(x3, w1, b1, w2, b2, *, n_tiles, sb_tile, compute_dtype):
    # x3: [6, n_tiles * sb_tile, 128] bf16
    sb_total = n_tiles * sb_tile
    kernel = functools.partial(_mlp_kernel, compute_dtype=compute_dtype)
    # TODO(synk): if profiling shows the x DMA exposed at these tile sizes,
    # add pipeline_mode=pl.Buffered(3) to the x BlockSpec below.
    return pl.pallas_call(
        kernel,
        out_shape=jax.ShapeDtypeStruct((sb_total, _LANE), jnp.float32),
        grid=(n_tiles,),
        in_specs=[
            # x tile: auto-pipelined (double-buffered) over the batch grid axis.
            pl.BlockSpec((_IN, sb_tile, _LANE), lambda i: (0, i, 0)),
            # Weights/biases: tiny, resident in SMEM for the whole kernel.
            pl.BlockSpec(memory_space=pltpu.SMEM),
            pl.BlockSpec(memory_space=pltpu.SMEM),
            pl.BlockSpec(memory_space=pltpu.SMEM),
            pl.BlockSpec(memory_space=pltpu.SMEM),
        ],
        out_specs=pl.BlockSpec((sb_tile, _LANE), lambda i: (i, 0)),
        compiler_params=pltpu.CompilerParams(
            dimension_semantics=("parallel",)),   # shard batch across TCs (v7x)
    )(x3, w1, b1, w2, b2)


@functools.partial(jax.jit, static_argnames=("tile_lanes", "compute_dtype"))
def net_forward(x, w1, b1, w2, b2, *, tile_lanes=_DEFAULT_TILE_LANES,
                compute_dtype=jnp.float32):
    """x: [B, 6] float32 (torch nn.Linear layout). Returns [B, 1] float32.

    On v6e/v7x pass compute_dtype=jnp.bfloat16 for bf16 MACs (f32 epilogue).
    """
    B = x.shape[0]
    assert x.shape[1] == _IN
    n_tiles, tile, Bp = _plan(B, tile_lanes)
    # One fused pass over x under jit: downcast -> pad -> transpose -> reshape.
    x3 = (jnp.pad(x.astype(jnp.bfloat16), ((0, Bp - B), (0, 0)))
          .T.reshape(_IN, Bp // _LANE, _LANE))
    out = _pallas_mlp(x3, w1, b1, w2, b2, n_tiles=n_tiles,
                      sb_tile=tile // _LANE, compute_dtype=compute_dtype)
    return out.reshape(Bp)[:B].reshape(B, 1)


@functools.partial(jax.jit, static_argnames=("tile_lanes", "compute_dtype"))
def net_forward_feature_major(xt, w1, b1, w2, b2, *,
                              tile_lanes=_DEFAULT_TILE_LANES,
                              compute_dtype=jnp.float32):
    """xt: [6, B] (feature-major) -- skips the wrapper-side transpose entirely."""
    assert xt.shape[0] == _IN
    B = xt.shape[1]
    n_tiles, tile, Bp = _plan(B, tile_lanes)
    x3 = (jnp.pad(xt.astype(jnp.bfloat16), ((0, 0), (0, Bp - B)))
          .reshape(_IN, Bp // _LANE, _LANE))
    out = _pallas_mlp(x3, w1, b1, w2, b2, n_tiles=n_tiles,
                      sb_tile=tile // _LANE, compute_dtype=compute_dtype)
    return out.reshape(Bp)[:B].reshape(B, 1)


def init_params(key):
    # Deterministic init mimicking torch.nn.Linear default:
    # U(-1/sqrt(fan_in), 1/sqrt(fan_in)) for both weight and bias.
    k1, k2, k3, k4 = jax.random.split(key, 4)
    bound1 = 1.0 / jnp.sqrt(6.0)
    bound2 = 1.0 / jnp.sqrt(10.0)
    w1 = jax.random.uniform(k1, (_IN, _HID), jnp.float32, -bound1, bound1)  # fc1.weight.T
    b1 = jax.random.uniform(k2, (_HID,), jnp.float32, -bound1, bound1)      # fc1.bias
    w2 = jax.random.uniform(k3, (_HID,), jnp.float32, -bound2, bound2)      # fc2.weight.T
    b2 = jax.random.uniform(k4, (1,), jnp.float32, -bound2, bound2)         # fc2.bias
    return w1, b1, w2, b2


def _reference(x, w1, b1, w2, b2):
    h = jnp.maximum(x @ w1 + b1, 0.0)
    return jax.nn.sigmoid(h @ w2.reshape(_HID, 1) + b2)


if __name__ == "__main__":
    key = jax.random.PRNGKey(0)
    k_params, k_x1, k_x2 = jax.random.split(key, 3)
    w1, b1, w2, b2 = init_params(k_params)

    # Small batch (matches the PyTorch module's 2-D [N, 6] input).
    x_small = jax.random.normal(k_x1, (8, _IN), jnp.float32)
    out_small = jax.block_until_ready(net_forward(x_small, w1, b1, w2, b2))
    ref_small = _reference(x_small, w1, b1, w2, b2)
    assert out_small.shape == (8, 1)
    assert jnp.allclose(out_small, ref_small, atol=5e-3), "small-batch mismatch"

    # Larger batch exercising the multi-step grid + unit-granular padding path.
    x_big = jax.random.normal(k_x2, (4100, _IN), jnp.float32)
    out_big = jax.block_until_ready(net_forward(x_big, w1, b1, w2, b2))
    ref_big = _reference(x_big, w1, b1, w2, b2)
    assert out_big.shape == (4100, 1)
    assert jnp.allclose(out_big, ref_big, atol=5e-3), "large-batch mismatch"

    # Feature-major entry point (no wrapper-side transpose at all).
    out_fm = jax.block_until_ready(
        net_forward_feature_major(x_big.T, w1, b1, w2, b2))
    assert out_fm.shape == (4100, 1)
    assert jnp.allclose(out_fm, ref_big, atol=5e-3), "feature-major mismatch"

    print("KERNEL_OK")
</pallas_src>

<mosaic_0001>
module attributes {stable_mosaic.version = 11 : i64} {
  func.func @_mlp_kernel(%arg0: i32, %arg1: memref<6x16x128xbf16, #tpu.memory_space<vmem>>, %arg2: memref<6x10xf32, #tpu.memory_space<smem>>, %arg3: memref<10xf32, #tpu.memory_space<smem>>, %arg4: memref<10xf32, #tpu.memory_space<smem>>, %arg5: memref<1xf32, #tpu.memory_space<smem>>, %arg6: memref<16x128xf32, #tpu.memory_space<vmem>>) attributes {dimension_semantics = [#tpu.dimension_semantics<parallel>], iteration_bounds = array<i64: 1>, scalar_prefetch = 0 : i64, scratch_operands = 0 : i64, tpu.core_type = #tpu.core_type<tc>, window_params = [{transform_indices = @transform_0, window_bounds = array<i64: 6, 16, 128>}, {transform_indices = @transform_1, window_bounds = array<i64: 6, 10>}, {transform_indices = @transform_2, window_bounds = array<i64: 10>}, {transform_indices = @transform_3, window_bounds = array<i64: 10>}, {transform_indices = @transform_4, window_bounds = array<i64: 1>}, {transform_indices = @transform_5, window_bounds = array<i64: 16, 128>}]} {
    %c0 = arith.constant 0 : index
    %c0_0 = arith.constant 0 : index
    %c0_1 = arith.constant 0 : index
    %0 = vector.load %arg1[%c0, %c0_0, %c0_1] : memref<6x16x128xbf16, #tpu.memory_space<vmem>>, vector<1x16x128xbf16>
    %1 = vector.shape_cast %0 : vector<1x16x128xbf16> to vector<16x128xbf16>
    %2 = arith.extf %1 : vector<16x128xbf16> to vector<16x128xf32>
    %c1 = arith.constant 1 : index
    %c0_2 = arith.constant 0 : index
    %c0_3 = arith.constant 0 : index
    %3 = vector.load %arg1[%c1, %c0_2, %c0_3] : memref<6x16x128xbf16, #tpu.memory_space<vmem>>, vector<1x16x128xbf16>
    %4 = vector.shape_cast %3 : vector<1x16x128xbf16> to vector<16x128xbf16>
    %5 = arith.extf %4 : vector<16x128xbf16> to vector<16x128xf32>
    %c2 = arith.constant 2 : index
    %c0_4 = arith.constant 0 : index
    %c0_5 = arith.constant 0 : index
    %6 = vector.load %arg1[%c2, %c0_4, %c0_5] : memref<6x16x128xbf16, #tpu.memory_space<vmem>>, vector<1x16x128xbf16>
    %7 = vector.shape_cast %6 : vector<1x16x128xbf16> to vector<16x128xbf16>
    %8 = arith.extf %7 : vector<16x128xbf16> to vector<16x128xf32>
    %c3 = arith.constant 3 : index
    %c0_6 = arith.constant 0 : index
    %c0_7 = arith.constant 0 : index
    %9 = vector.load %arg1[%c3, %c0_6, %c0_7] : memref<6x16x128xbf16, #tpu.memory_space<vmem>>, vector<1x16x128xbf16>
    %10 = vector.shape_cast %9 : vector<1x16x128xbf16> to vector<16x128xbf16>
    %11 = arith.extf %10 : vector<16x128xbf16> to vector<16x128xf32>
    %c4 = arith.constant 4 : index
    %c0_8 = arith.constant 0 : index
    %c0_9 = arith.constant 0 : index
    %12 = vector.load %arg1[%c4, %c0_8, %c0_9] : memref<6x16x128xbf16, #tpu.memory_space<vmem>>, vector<1x16x128xbf16>
    %13 = vector.shape_cast %12 : vector<1x16x128xbf16> to vector<16x128xbf16>
    %14 = arith.extf %13 : vector<16x128xbf16> to vector<16x128xf32>
    %c5 = arith.constant 5 : index
    %c0_10 = arith.constant 0 : index
    %c0_11 = arith.constant 0 : index
    %15 = vector.load %arg1[%c5, %c0_10, %c0_11] : memref<6x16x128xbf16, #tpu.memory_space<vmem>>, vector<1x16x128xbf16>
    %16 = vector.shape_cast %15 : vector<1x16x128xbf16> to vector<16x128xbf16>
    %17 = arith.extf %16 : vector<16x128xbf16> to vector<16x128xf32>
    %c0_12 = arith.constant 0 : index
    %c0_13 = arith.constant 0 : index
    %18 = memref.load %arg2[%c0_12, %c0_13] : memref<6x10xf32, #tpu.memory_space<smem>>
    %19 = vector.broadcast %18 : f32 to vector<16x128xf32>
    %20 = arith.mulf %2, %19 : vector<16x128xf32>
    %c1_14 = arith.constant 1 : index
    %c0_15 = arith.constant 0 : index
    %21 = memref.load %arg2[%c1_14, %c0_15] : memref<6x10xf32, #tpu.memory_space<smem>>
    %22 = vector.broadcast %21 : f32 to vector<16x128xf32>
    %23 = arith.mulf %5, %22 : vector<16x128xf32>
    %24 = arith.addf %20, %23 : vector<16x128xf32>
    %c2_16 = arith.constant 2 : index
    %c0_17 = arith.constant 0 : index
    %25 = memref.load %arg2[%c2_16, %c0_17] : memref<6x10xf32, #tpu.memory_space<smem>>
    %26 = vector.broadcast %25 : f32 to vector<16x128xf32>
    %27 = arith.mulf %8, %26 : vector<16x128xf32>
    %28 = arith.addf %24, %27 : vector<16x128xf32>
    %c3_18 = arith.constant 3 : index
    %c0_19 = arith.constant 0 : index
    %29 = memref.load %arg2[%c3_18, %c0_19] : memref<6x10xf32, #tpu.memory_space<smem>>
    %30 = vector.broadcast %29 : f32 to vector<16x128xf32>
    %31 = arith.mulf %11, %30 : vector<16x128xf32>
    %32 = arith.addf %28, %31 : vector<16x128xf32>
    %c4_20 = arith.constant 4 : index
    %c0_21 = arith.constant 0 : index
    %33 = memref.load %arg2[%c4_20, %c0_21] : memref<6x10xf32, #tpu.memory_space<smem>>
    %34 = vector.broadcast %33 : f32 to vector<16x128xf32>
    %35 = arith.mulf %14, %34 : vector<16x128xf32>
    %36 = arith.addf %32, %35 : vector<16x128xf32>
    %c5_22 = arith.constant 5 : index
    %c0_23 = arith.constant 0 : index
    %37 = memref.load %arg2[%c5_22, %c0_23] : memref<6x10xf32, #tpu.memory_space<smem>>
    %38 = vector.broadcast %37 : f32 to vector<16x128xf32>
    %39 = arith.mulf %17, %38 : vector<16x128xf32>
    %40 = arith.addf %36, %39 : vector<16x128xf32>
    %c0_24 = arith.constant 0 : index
    %41 = memref.load %arg3[%c0_24] : memref<10xf32, #tpu.memory_space<smem>>
    %42 = vector.broadcast %41 : f32 to vector<16x128xf32>
    %43 = arith.addf %40, %42 : vector<16x128xf32>
    %cst = arith.constant 0.000000e+00 : f32
    %44 = vector.broadcast %cst : f32 to vector<16x128xf32>
    %45 = arith.maximumf %43, %44 : vector<16x128xf32>
    %c0_25 = arith.constant 0 : index
    %46 = memref.load %arg4[%c0_25] : memref<10xf32, #tpu.memory_space<smem>>
    %47 = vector.broadcast %46 : f32 to vector<16x128xf32>
    %48 = arith.mulf %45, %47 : vector<16x128xf32>
    %c0_26 = arith.constant 0 : index
    %c1_27 = arith.constant 1 : index
    %49 = memref.load %arg2[%c0_26, %c1_27] : memref<6x10xf32, #tpu.memory_space<smem>>
    %50 = vector.broadcast %49 : f32 to vector<16x128xf32>
    %51 = arith.mulf %2, %50 : vector<16x128xf32>
    %c1_28 = arith.constant 1 : index
    %c1_29 = arith.constant 1 : index
    %52 = memref.load %arg2[%c1_28, %c1_29] : memref<6x10xf32, #tpu.memory_space<smem>>
    %53 = vector.broadcast %52 : f32 to vector<16x128xf32>
    %54 = arith.mulf %5, %53 : vector<16x128xf32>
    %55 = arith.addf %51, %54 : vector<16x128xf32>
    %c2_30 = arith.constant 2 : index
    %c1_31 = arith.constant 1 : index
    %56 = memref.load %arg2[%c2_30, %c1_31] : memref<6x10xf32, #tpu.memory_space<smem>>
    %57 = vector.broadcast %56 : f32 to vector<16x128xf32>
    %58 = arith.mulf %8, %57 : vector<16x128xf32>
    %59 = arith.addf %55, %58 : vector<16x128xf32>
    %c3_32 = arith.constant 3 : index
    %c1_33 = arith.constant 1 : index
    %60 = memref.load %arg2[%c3_32, %c1_33] : memref<6x10xf32, #tpu.memory_space<smem>>
    %61 = vector.broadcast %60 : f32 to vector<16x128xf32>
    %62 = arith.mulf %11, %61 : vector<16x128xf32>
    %63 = arith.addf %59, %62 : vector<16x128xf32>
    %c4_34 = arith.constant 4 : index
    %c1_35 = arith.constant 1 : index
    %64 = memref.load %arg2[%c4_34, %c1_35] : memref<6x10xf32, #tpu.memory_space<smem>>
    %65 = vector.broadcast %64 : f32 to vector<16x128xf32>
    %66 = arith.mulf %14, %65 : vector<16x128xf32>
    %67 = arith.addf %63, %66 : vector<16x128xf32>
    %c5_36 = arith.constant 5 : index
    %c1_37 = arith.constant 1 : index
    %68 = memref.load %arg2[%c5_36, %c1_37] : memref<6x10xf32, #tpu.memory_space<smem>>
    %69 = vector.broadcast %68 : f32 to vector<16x128xf32>
    %70 = arith.mulf %17, %69 : vector<16x128xf32>
    %71 = arith.addf %67, %70 : vector<16x128xf32>
    %c1_38 = arith.constant 1 : index
    %72 = memref.load %arg3[%c1_38] : memref<10xf32, #tpu.memory_space<smem>>
    %73 = vector.broadcast %72 : f32 to vector<16x128xf32>
    %74 = arith.addf %71, %73 : vector<16x128xf32>
    %cst_39 = arith.constant 0.000000e+00 : f32
    %75 = vector.broadcast %cst_39 : f32 to vector<16x128xf32>
    %76 = arith.maximumf %74, %75 : vector<16x128xf32>
    %c1_40 = arith.constant 1 : index
    %77 = memref.load %arg4[%c1_40] : memref<10xf32, #tpu.memory_space<smem>>
    %78 = vector.broadcast %77 : f32 to vector<16x128xf32>
    %79 = arith.mulf %76, %78 : vector<16x128xf32>
    %80 = arith.addf %48, %79 : vector<16x128xf32>
    %c0_41 = arith.constant 0 : index
    %c2_42 = arith.constant 2 : index
    %81 = memref.load %arg2[%c0_41, %c2_42] : memref<6x10xf32, #tpu.memory_space<smem>>
    %82 = vector.broadcast %81 : f32 to vector<16x128xf32>
    %83 = arith.mulf %2, %82 : vector<16x128xf32>
    %c1_43 = arith.constant 1 : index
    %c2_44 = arith.constant 2 : index
    %84 = memref.load %arg2[%c1_43, %c2_44] : memref<6x10xf32, #tpu.memory_space<smem>>
    %85 = vector.broadcast %84 : f32 to vector<16x128xf32>
    %86 = arith.mulf %5, %85 : vector<16x128xf32>
    %87 = arith.addf %83, %86 : vector<16x128xf32>
    %c2_45 = arith.constant 2 : index
    %c2_46 = arith.constant 2 : index
    %88 = memref.load %arg2[%c2_45, %c2_46] : memref<6x10xf32, #tpu.memory_space<smem>>
    %89 = vector.broadcast %88 : f32 to vector<16x128xf32>
    %90 = arith.mulf %8, %89 : vector<16x128xf32>
    %91 = arith.addf %87, %90 : vector<16x128xf32>
    %c3_47 = arith.constant 3 : index
    %c2_48 = arith.constant 2 : index
    %92 = memref.load %arg2[%c3_47, %c2_48] : memref<6x10xf32, #tpu.memory_space<smem>>
    %93 = vector.broadcast %92 : f32 to vector<16x128xf32>
    %94 = arith.mulf %11, %93 : vector<16x128xf32>
    %95 = arith.addf %91, %94 : vector<16x128xf32>
    %c4_49 = arith.constant 4 : index
    %c2_50 = arith.constant 2 : index
    %96 = memref.load %arg2[%c4_49, %c2_50] : memref<6x10xf32, #tpu.memory_space<smem>>
    %97 = vector.broadcast %96 : f32 to vector<16x128xf32>
    %98 = arith.mulf %14, %97 : vector<16x128xf32>
    %99 = arith.addf %95, %98 : vector<16x128xf32>
    %c5_51 = arith.constant 5 : index
    %c2_52 = arith.constant 2 : index
    %100 = memref.load %arg2[%c5_51, %c2_52] : memref<6x10xf32, #tpu.memory_space<smem>>
    %101 = vector.broadcast %100 : f32 to vector<16x128xf32>
    %102 = arith.mulf %17, %101 : vector<16x128xf32>
    %103 = arith.addf %99, %102 : vector<16x128xf32>
    %c2_53 = arith.constant 2 : index
    %104 = memref.load %arg3[%c2_53] : memref<10xf32, #tpu.memory_space<smem>>
    %105 = vector.broadcast %104 : f32 to vector<16x128xf32>
    %106 = arith.addf %103, %105 : vector<16x128xf32>
    %cst_54 = arith.constant 0.000000e+00 : f32
    %107 = vector.broadcast %cst_54 : f32 to vector<16x128xf32>
    %108 = arith.maximumf %106, %107 : vector<16x128xf32>
    %c2_55 = arith.constant 2 : index
    %109 = memref.load %arg4[%c2_55] : memref<10xf32, #tpu.memory_space<smem>>
    %110 = vector.broadcast %109 : f32 to vector<16x128xf32>
    %111 = arith.mulf %108, %110 : vector<16x128xf32>
    %112 = arith.addf %80, %111 : vector<16x128xf32>
    %c0_56 = arith.constant 0 : index
    %c3_57 = arith.constant 3 : index
    %113 = memref.load %arg2[%c0_56, %c3_57] : memref<6x10xf32, #tpu.memory_space<smem>>
    %114 = vector.broadcast %113 : f32 to vector<16x128xf32>
    %115 = arith.mulf %2, %114 : vector<16x128xf32>
    %c1_58 = arith.constant 1 : index
    %c3_59 = arith.constant 3 : index
    %116 = memref.load %arg2[%c1_58, %c3_59] : memref<6x10xf32, #tpu.memory_space<smem>>
    %117 = vector.broadcast %116 : f32 to vector<16x128xf32>
    %118 = arith.mulf %5, %117 : vector<16x128xf32>
    %119 = arith.addf %115, %118 : vector<16x128xf32>
    %c2_60 = arith.constant 2 : index
    %c3_61 = arith.constant 3 : index
    %120 = memref.load %arg2[%c2_60, %c3_61] : memref<6x10xf32, #tpu.memory_space<smem>>
    %121 = vector.broadcast %120 : f32 to vector<16x128xf32>
    %122 = arith.mulf %8, %121 : vector<16x128xf32>
    %123 = arith.addf %119, %122 : vector<16x128xf32>
    %c3_62 = arith.constant 3 : index
    %c3_63 = arith.constant 3 : index
    %124 = memref.load %arg2[%c3_62, %c3_63] : memref<6x10xf32, #tpu.memory_space<smem>>
    %125 = vector.broadcast %124 : f32 to vector<16x128xf32>
    %126 = arith.mulf %11, %125 : vector<16x128xf32>
    %127 = arith.addf %123, %126 : vector<16x128xf32>
    %c4_64 = arith.constant 4 : index
    %c3_65 = arith.constant 3 : index
    %128 = memref.load %arg2[%c4_64, %c3_65] : memref<6x10xf32, #tpu.memory_space<smem>>
    %129 = vector.broadcast %128 : f32 to vector<16x128xf32>
    %130 = arith.mulf %14, %129 : vector<16x128xf32>
    %131 = arith.addf %127, %130 : vector<16x128xf32>
    %c5_66 = arith.constant 5 : index
    %c3_67 = arith.constant 3 : index
    %132 = memref.load %arg2[%c5_66, %c3_67] : memref<6x10xf32, #tpu.memory_space<smem>>
    %133 = vector.broadcast %132 : f32 to vector<16x128xf32>
    %134 = arith.mulf %17, %133 : vector<16x128xf32>
    %135 = arith.addf %131, %134 : vector<16x128xf32>
    %c3_68 = arith.constant 3 : index
    %136 = memref.load %arg3[%c3_68] : memref<10xf32, #tpu.memory_space<smem>>
    %137 = vector.broadcast %136 : f32 to vector<16x128xf32>
    %138 = arith.addf %135, %137 : vector<16x128xf32>
    %cst_69 = arith.constant 0.000000e+00 : f32
    %139 = vector.broadcast %cst_69 : f32 to vector<16x128xf32>
    %140 = arith.maximumf %138, %139 : vector<16x128xf32>
    %c3_70 = arith.constant 3 : index
    %141 = memref.load %arg4[%c3_70] : memref<10xf32, #tpu.memory_space<smem>>
    %142 = vector.broadcast %141 : f32 to vector<16x128xf32>
    %143 = arith.mulf %140, %142 : vector<16x128xf32>
    %144 = arith.addf %112, %143 : vector<16x128xf32>
    %c0_71 = arith.constant 0 : index
    %c4_72 = arith.constant 4 : index
    %145 = memref.load %arg2[%c0_71, %c4_72] : memref<6x10xf32, #tpu.memory_space<smem>>
    %146 = vector.broadcast %145 : f32 to vector<16x128xf32>
    %147 = arith.mulf %2, %146 : vector<16x128xf32>
    %c1_73 = arith.constant 1 : index
    %c4_74 = arith.constant 4 : index
    %148 = memref.load %arg2[%c1_73, %c4_74] : memref<6x10xf32, #tpu.memory_space<smem>>
    %149 = vector.broadcast %148 : f32 to vector<16x128xf32>
    %150 = arith.mulf %5, %149 : vector<16x128xf32>
    %151 = arith.addf %147, %150 : vector<16x128xf32>
    %c2_75 = arith.constant 2 : index
    %c4_76 = arith.constant 4 : index
    %152 = memref.load %arg2[%c2_75, %c4_76] : memref<6x10xf32, #tpu.memory_space<smem>>
    %153 = vector.broadcast %152 : f32 to vector<16x128xf32>
    %154 = arith.mulf %8, %153 : vector<16x128xf32>
    %155 = arith.addf %151, %154 : vector<16x128xf32>
    %c3_77 = arith.constant 3 : index
    %c4_78 = arith.constant 4 : index
    %156 = memref.load %arg2[%c3_77, %c4_78] : memref<6x10xf32, #tpu.memory_space<smem>>
    %157 = vector.broadcast %156 : f32 to vector<16x128xf32>
    %158 = arith.mulf %11, %157 : vector<16x128xf32>
    %159 = arith.addf %155, %158 : vector<16x128xf32>
    %c4_79 = arith.constant 4 : index
    %c4_80 = arith.constant 4 : index
    %160 = memref.load %arg2[%c4_79, %c4_80] : memref<6x10xf32, #tpu.memory_space<smem>>
    %161 = vector.broadcast %160 : f32 to vector<16x128xf32>
    %162 = arith.mulf %14, %161 : vector<16x128xf32>
    %163 = arith.addf %159, %162 : vector<16x128xf32>
    %c5_81 = arith.constant 5 : index
    %c4_82 = arith.constant 4 : index
    %164 = memref.load %arg2[%c5_81, %c4_82] : memref<6x10xf32, #tpu.memory_space<smem>>
    %165 = vector.broadcast %164 : f32 to vector<16x128xf32>
    %166 = arith.mulf %17, %165 : vector<16x128xf32>
    %167 = arith.addf %163, %166 : vector<16x128xf32>
    %c4_83 = arith.constant 4 : index
    %168 = memref.load %arg3[%c4_83] : memref<10xf32, #tpu.memory_space<smem>>
    %169 = vector.broadcast %168 : f32 to vector<16x128xf32>
    %170 = arith.addf %167, %169 : vector<16x128xf32>
    %cst_84 = arith.constant 0.000000e+00 : f32
    %171 = vector.broadcast %cst_84 : f32 to vector<16x128xf32>
    %172 = arith.maximumf %170, %171 : vector<16x128xf32>
    %c4_85 = arith.constant 4 : index
    %173 = memref.load %arg4[%c4_85] : memref<10xf32, #tpu.memory_space<smem>>
    %174 = vector.broadcast %173 : f32 to vector<16x128xf32>
    %175 = arith.mulf %172, %174 : vector<16x128xf32>
    %176 = arith.addf %144, %175 : vector<16x128xf32>
    %c0_86 = arith.constant 0 : index
    %c5_87 = arith.constant 5 : index
    %177 = memref.load %arg2[%c0_86, %c5_87] : memref<6x10xf32, #tpu.memory_space<smem>>
    %178 = vector.broadcast %177 : f32 to vector<16x128xf32>
    %179 = arith.mulf %2, %178 : vector<16x128xf32>
    %c1_88 = arith.constant 1 : index
    %c5_89 = arith.constant 5 : index
    %180 = memref.load %arg2[%c1_88, %c5_89] : memref<6x10xf32, #tpu.memory_space<smem>>
    %181 = vector.broadcast %180 : f32 to vector<16x128xf32>
    %182 = arith.mulf %5, %181 : vector<16x128xf32>
    %183 = arith.addf %179, %182 : vector<16x128xf32>
    %c2_90 = arith.constant 2 : index
    %c5_91 = arith.constant 5 : index
    %184 = memref.load %arg2[%c2_90, %c5_91] : memref<6x10xf32, #tpu.memory_space<smem>>
    %185 = vector.broadcast %184 : f32 to vector<16x128xf32>
    %186 = arith.mulf %8, %185 : vector<16x128xf32>
    %187 = arith.addf %183, %186 : vector<16x128xf32>
    %c3_92 = arith.constant 3 : index
    %c5_93 = arith.constant 5 : index
    %188 = memref.load %arg2[%c3_92, %c5_93] : memref<6x10xf32, #tpu.memory_space<smem>>
    %189 = vector.broadcast %188 : f32 to vector<16x128xf32>
    %190 = arith.mulf %11, %189 : vector<16x128xf32>
    %191 = arith.addf %187, %190 : vector<16x128xf32>
    %c4_94 = arith.constant 4 : index
    %c5_95 = arith.constant 5 : index
    %192 = memref.load %arg2[%c4_94, %c5_95] : memref<6x10xf32, #tpu.memory_space<smem>>
    %193 = vector.broadcast %192 : f32 to vector<16x128xf32>
    %194 = arith.mulf %14, %193 : vector<16x128xf32>
    %195 = arith.addf %191, %194 : vector<16x128xf32>
    %c5_96 = arith.constant 5 : index
    %c5_97 = arith.constant 5 : index
    %196 = memref.load %arg2[%c5_96, %c5_97] : memref<6x10xf32, #tpu.memory_space<smem>>
    %197 = vector.broadcast %196 : f32 to vector<16x128xf32>
    %198 = arith.mulf %17, %197 : vector<16x128xf32>
    %199 = arith.addf %195, %198 : vector<16x128xf32>
    %c5_98 = arith.constant 5 : index
    %200 = memref.load %arg3[%c5_98] : memref<10xf32, #tpu.memory_space<smem>>
    %201 = vector.broadcast %200 : f32 to vector<16x128xf32>
    %202 = arith.addf %199, %201 : vector<16x128xf32>
    %cst_99 = arith.constant 0.000000e+00 : f32
    %203 = vector.broadcast %cst_99 : f32 to vector<16x128xf32>
    %204 = arith.maximumf %202, %203 : vector<16x128xf32>
    %c5_100 = arith.constant 5 : index
    %205 = memref.load %arg4[%c5_100] : memref<10xf32, #tpu.memory_space<smem>>
    %206 = vector.broadcast %205 : f32 to vector<16x128xf32>
    %207 = arith.mulf %204, %206 : vector<16x128xf32>
    %208 = arith.addf %176, %207 : vector<16x128xf32>
    %c0_101 = arith.constant 0 : index
    %c6 = arith.constant 6 : index
    %209 = memref.load %arg2[%c0_101, %c6] : memref<6x10xf32, #tpu.memory_space<smem>>
    %210 = vector.broadcast %209 : f32 to vector<16x128xf32>
    %211 = arith.mulf %2, %210 : vector<16x128xf32>
    %c1_102 = arith.constant 1 : index
    %c6_103 = arith.constant 6 : index
    %212 = memref.load %arg2[%c1_102, %c6_103] : memref<6x10xf32, #tpu.memory_space<smem>>
    %213 = vector.broadcast %212 : f32 to vector<16x128xf32>
    %214 = arith.mulf %5, %213 : vector<16x128xf32>
    %215 = arith.addf %211, %214 : vector<16x128xf32>
    %c2_104 = arith.constant 2 : index
    %c6_105 = arith.constant 6 : index
    %216 = memref.load %arg2[%c2_104, %c6_105] : memref<6x10xf32, #tpu.memory_space<smem>>
    %217 = vector.broadcast %216 : f32 to vector<16x128xf32>
    %218 = arith.mulf %8, %217 : vector<16x128xf32>
    %219 = arith.addf %215, %218 : vector<16x128xf32>
    %c3_106 = arith.constant 3 : index
    %c6_107 = arith.constant 6 : index
    %220 = memref.load %arg2[%c3_106, %c6_107] : memref<6x10xf32, #tpu.memory_space<smem>>
    %221 = vector.broadcast %220 : f32 to vector<16x128xf32>
    %222 = arith.mulf %11, %221 : vector<16x128xf32>
    %223 = arith.addf %219, %222 : vector<16x128xf32>
    %c4_108 = arith.constant 4 : index
    %c6_109 = arith.constant 6 : index
    %224 = memref.load %arg2[%c4_108, %c6_109] : memref<6x10xf32, #tpu.memory_space<smem>>
    %225 = vector.broadcast %224 : f32 to vector<16x128xf32>
    %226 = arith.mulf %14, %225 : vector<16x128xf32>
    %227 = arith.addf %223, %226 : vector<16x128xf32>
    %c5_110 = arith.constant 5 : index
    %c6_111 = arith.constant 6 : index
    %228 = memref.load %arg2[%c5_110, %c6_111] : memref<6x10xf32, #tpu.memory_space<smem>>
    %229 = vector.broadcast %228 : f32 to vector<16x128xf32>
    %230 = arith.mulf %17, %229 : vector<16x128xf32>
    %231 = arith.addf %227, %230 : vector<16x128xf32>
    %c6_112 = arith.constant 6 : index
    %232 = memref.load %arg3[%c6_112] : memref<10xf32, #tpu.memory_space<smem>>
    %233 = vector.broadcast %232 : f32 to vector<16x128xf32>
    %234 = arith.addf %231, %233 : vector<16x128xf32>
    %cst_113 = arith.constant 0.000000e+00 : f32
    %235 = vector.broadcast %cst_113 : f32 to vector<16x128xf32>
    %236 = arith.maximumf %234, %235 : vector<16x128xf32>
    %c6_114 = arith.constant 6 : index
    %237 = memref.load %arg4[%c6_114] : memref<10xf32, #tpu.memory_space<smem>>
    %238 = vector.broadcast %237 : f32 to vector<16x128xf32>
    %239 = arith.mulf %236, %238 : vector<16x128xf32>
    %240 = arith.addf %208, %239 : vector<16x128xf32>
    %c0_115 = arith.constant 0 : index
    %c7 = arith.constant 7 : index
    %241 = memref.load %arg2[%c0_115, %c7] : memref<6x10xf32, #tpu.memory_space<smem>>
    %242 = vector.broadcast %241 : f32 to vector<16x128xf32>
    %243 = arith.mulf %2, %242 : vector<16x128xf32>
    %c1_116 = arith.constant 1 : index
    %c7_117 = arith.constant 7 : index
    %244 = memref.load %arg2[%c1_116, %c7_117] : memref<6x10xf32, #tpu.memory_space<smem>>
    %245 = vector.broadcast %244 : f32 to vector<16x128xf32>
    %246 = arith.mulf %5, %245 : vector<16x128xf32>
    %247 = arith.addf %243, %246 : vector<16x128xf32>
    %c2_118 = arith.constant 2 : index
    %c7_119 = arith.constant 7 : index
    %248 = memref.load %arg2[%c2_118, %c7_119] : memref<6x10xf32, #tpu.memory_space<smem>>
    %249 = vector.broadcast %248 : f32 to vector<16x128xf32>
    %250 = arith.mulf %8, %249 : vector<16x128xf32>
    %251 = arith.addf %247, %250 : vector<16x128xf32>
    %c3_120 = arith.constant 3 : index
    %c7_121 = arith.constant 7 : index
    %252 = memref.load %arg2[%c3_120, %c7_121] : memref<6x10xf32, #tpu.memory_space<smem>>
    %253 = vector.broadcast %252 : f32 to vector<16x128xf32>
    %254 = arith.mulf %11, %253 : vector<16x128xf32>
    %255 = arith.addf %251, %254 : vector<16x128xf32>
    %c4_122 = arith.constant 4 : index
    %c7_123 = arith.constant 7 : index
    %256 = memref.load %arg2[%c4_122, %c7_123] : memref<6x10xf32, #tpu.memory_space<smem>>
    %257 = vector.broadcast %256 : f32 to vector<16x128xf32>
    %258 = arith.mulf %14, %257 : vector<16x128xf32>
    %259 = arith.addf %255, %258 : vector<16x128xf32>
    %c5_124 = arith.constant 5 : index
    %c7_125 = arith.constant 7 : index
    %260 = memref.load %arg2[%c5_124, %c7_125] : memref<6x10xf32, #tpu.memory_space<smem>>
    %261 = vector.broadcast %260 : f32 to vector<16x128xf32>
    %262 = arith.mulf %17, %261 : vector<16x128xf32>
    %263 = arith.addf %259, %262 : vector<16x128xf32>
    %c7_126 = arith.constant 7 : index
    %264 = memref.load %arg3[%c7_126] : memref<10xf32, #tpu.memory_space<smem>>
    %265 = vector.broadcast %264 : f32 to vector<16x128xf32>
    %266 = arith.addf %263, %265 : vector<16x128xf32>
    %cst_127 = arith.constant 0.000000e+00 : f32
    %267 = vector.broadcast %cst_127 : f32 to vector<16x128xf32>
    %268 = arith.maximumf %266, %267 : vector<16x128xf32>
    %c7_128 = arith.constant 7 : index
    %269 = memref.load %arg4[%c7_128] : memref<10xf32, #tpu.memory_space<smem>>
    %270 = vector.broadcast %269 : f32 to vector<16x128xf32>
    %271 = arith.mulf %268, %270 : vector<16x128xf32>
    %272 = arith.addf %240, %271 : vector<16x128xf32>
    %c0_129 = arith.constant 0 : index
    %c8 = arith.constant 8 : index
    %273 = memref.load %arg2[%c0_129, %c8] : memref<6x10xf32, #tpu.memory_space<smem>>
    %274 = vector.broadcast %273 : f32 to vector<16x128xf32>
    %275 = arith.mulf %2, %274 : vector<16x128xf32>
    %c1_130 = arith.constant 1 : index
    %c8_131 = arith.constant 8 : index
    %276 = memref.load %arg2[%c1_130, %c8_131] : memref<6x10xf32, #tpu.memory_space<smem>>
    %277 = vector.broadcast %276 : f32 to vector<16x128xf32>
    %278 = arith.mulf %5, %277 : vector<16x128xf32>
    %279 = arith.addf %275, %278 : vector<16x128xf32>
    %c2_132 = arith.constant 2 : index
    %c8_133 = arith.constant 8 : index
    %280 = memref.load %arg2[%c2_132, %c8_133] : memref<6x10xf32, #tpu.memory_space<smem>>
    %281 = vector.broadcast %280 : f32 to vector<16x128xf32>
    %282 = arith.mulf %8, %281 : vector<16x128xf32>
    %283 = arith.addf %279, %282 : vector<16x128xf32>
    %c3_134 = arith.constant 3 : index
    %c8_135 = arith.constant 8 : index
    %284 = memref.load %arg2[%c3_134, %c8_135] : memref<6x10xf32, #tpu.memory_space<smem>>
    %285 = vector.broadcast %284 : f32 to vector<16x128xf32>
    %286 = arith.mulf %11, %285 : vector<16x128xf32>
    %287 = arith.addf %283, %286 : vector<16x128xf32>
    %c4_136 = arith.constant 4 : index
    %c8_137 = arith.constant 8 : index
    %288 = memref.load %arg2[%c4_136, %c8_137] : memref<6x10xf32, #tpu.memory_space<smem>>
    %289 = vector.broadcast %288 : f32 to vector<16x128xf32>
    %290 = arith.mulf %14, %289 : vector<16x128xf32>
    %291 = arith.addf %287, %290 : vector<16x128xf32>
    %c5_138 = arith.constant 5 : index
    %c8_139 = arith.constant 8 : index
    %292 = memref.load %arg2[%c5_138, %c8_139] : memref<6x10xf32, #tpu.memory_space<smem>>
    %293 = vector.broadcast %292 : f32 to vector<16x128xf32>
    %294 = arith.mulf %17, %293 : vector<16x128xf32>
    %295 = arith.addf %291, %294 : vector<16x128xf32>
    %c8_140 = arith.constant 8 : index
    %296 = memref.load %arg3[%c8_140] : memref<10xf32, #tpu.memory_space<smem>>
    %297 = vector.broadcast %296 : f32 to vector<16x128xf32>
    %298 = arith.addf %295, %297 : vector<16x128xf32>
    %cst_141 = arith.constant 0.000000e+00 : f32
    %299 = vector.broadcast %cst_141 : f32 to vector<16x128xf32>
    %300 = arith.maximumf %298, %299 : vector<16x128xf32>
    %c8_142 = arith.constant 8 : index
    %301 = memref.load %arg4[%c8_142] : memref<10xf32, #tpu.memory_space<smem>>
    %302 = vector.broadcast %301 : f32 to vector<16x128xf32>
    %303 = arith.mulf %300, %302 : vector<16x128xf32>
    %304 = arith.addf %272, %303 : vector<16x128xf32>
    %c0_143 = arith.constant 0 : index
    %c9 = arith.constant 9 : index
    %305 = memref.load %arg2[%c0_143, %c9] : memref<6x10xf32, #tpu.memory_space<smem>>
    %306 = vector.broadcast %305 : f32 to vector<16x128xf32>
    %307 = arith.mulf %2, %306 : vector<16x128xf32>
    %c1_144 = arith.constant 1 : index
    %c9_145 = arith.constant 9 : index
    %308 = memref.load %arg2[%c1_144, %c9_145] : memref<6x10xf32, #tpu.memory_space<smem>>
    %309 = vector.broadcast %308 : f32 to vector<16x128xf32>
    %310 = arith.mulf %5, %309 : vector<16x128xf32>
    %311 = arith.addf %307, %310 : vector<16x128xf32>
    %c2_146 = arith.constant 2 : index
    %c9_147 = arith.constant 9 : index
    %312 = memref.load %arg2[%c2_146, %c9_147] : memref<6x10xf32, #tpu.memory_space<smem>>
    %313 = vector.broadcast %312 : f32 to vector<16x128xf32>
    %314 = arith.mulf %8, %313 : vector<16x128xf32>
    %315 = arith.addf %311, %314 : vector<16x128xf32>
    %c3_148 = arith.constant 3 : index
    %c9_149 = arith.constant 9 : index
    %316 = memref.load %arg2[%c3_148, %c9_149] : memref<6x10xf32, #tpu.memory_space<smem>>
    %317 = vector.broadcast %316 : f32 to vector<16x128xf32>
    %318 = arith.mulf %11, %317 : vector<16x128xf32>
    %319 = arith.addf %315, %318 : vector<16x128xf32>
    %c4_150 = arith.constant 4 : index
    %c9_151 = arith.constant 9 : index
    %320 = memref.load %arg2[%c4_150, %c9_151] : memref<6x10xf32, #tpu.memory_space<smem>>
    %321 = vector.broadcast %320 : f32 to vector<16x128xf32>
    %322 = arith.mulf %14, %321 : vector<16x128xf32>
    %323 = arith.addf %319, %322 : vector<16x128xf32>
    %c5_152 = arith.constant 5 : index
    %c9_153 = arith.constant 9 : index
    %324 = memref.load %arg2[%c5_152, %c9_153] : memref<6x10xf32, #tpu.memory_space<smem>>
    %325 = vector.broadcast %324 : f32 to vector<16x128xf32>
    %326 = arith.mulf %17, %325 : vector<16x128xf32>
    %327 = arith.addf %323, %326 : vector<16x128xf32>
    %c9_154 = arith.constant 9 : index
    %328 = memref.load %arg3[%c9_154] : memref<10xf32, #tpu.memory_space<smem>>
    %329 = vector.broadcast %328 : f32 to vector<16x128xf32>
    %330 = arith.addf %327, %329 : vector<16x128xf32>
    %cst_155 = arith.constant 0.000000e+00 : f32
    %331 = vector.broadcast %cst_155 : f32 to vector<16x128xf32>
    %332 = arith.maximumf %330, %331 : vector<16x128xf32>
    %c9_156 = arith.constant 9 : index
    %333 = memref.load %arg4[%c9_156] : memref<10xf32, #tpu.memory_space<smem>>
    %334 = vector.broadcast %333 : f32 to vector<16x128xf32>
    %335 = arith.mulf %332, %334 : vector<16x128xf32>
    %336 = arith.addf %304, %335 : vector<16x128xf32>
    %c0_157 = arith.constant 0 : index
    %337 = memref.load %arg5[%c0_157] : memref<1xf32, #tpu.memory_space<smem>>
    %338 = vector.broadcast %337 : f32 to vector<16x128xf32>
    %339 = arith.addf %336, %338 : vector<16x128xf32>
    %cst_158 = arith.constant 0.000000e+00 : f32
    %340 = vector.broadcast %cst_158 : f32 to vector<16x128xf32>
    %341 = arith.subf %340, %339 : vector<16x128xf32>
    %342 = math.exp %341 : vector<16x128xf32>
    %cst_159 = arith.constant 1.000000e+00 : f32
    %343 = vector.broadcast %cst_159 : f32 to vector<16x128xf32>
    %344 = arith.addf %343, %342 : vector<16x128xf32>
    %345 = tpu.reciprocal %344 {approx = true} : vector<16x128xf32> -> vector<16x128xf32>
    %c0_160 = arith.constant 0 : index
    %c0_161 = arith.constant 0 : index
    %346 = vector.load %arg6[%c0_160, %c0_161] : memref<16x128xf32, #tpu.memory_space<vmem>>, vector<16x128xf32>
    tpu.vector_store %arg6[%c0_160, %c0_161], %345 {strides = array<i32>} : memref<16x128xf32, #tpu.memory_space<vmem>>, vector<16x128xf32>,
    return
  }
  func.func @transform_0(%arg0: i32) -> (i32, i32, i32) {
    %c0_i32 = arith.constant 0 : i32
    %c0_i32_0 = arith.constant 0 : i32
    %c0_i32_1 = arith.constant 0 : i32
    return %c0_i32, %arg0, %c0_i32_0 : i32, i32, i32
  }
  func.func @transform_1(%arg0: i32) -> (i32, i32) {
    %c0_i32 = arith.constant 0 : i32
    %c0_i32_0 = arith.constant 0 : i32
    %c0_i32_1 = arith.constant 0 : i32
    return %c0_i32, %c0_i32_0 : i32, i32
  }
  func.func @transform_2(%arg0: i32) -> i32 {
    %c0_i32 = arith.constant 0 : i32
    %c0_i32_0 = arith.constant 0 : i32
    return %c0_i32 : i32
  }
  func.func @transform_3(%arg0: i32) -> i32 {
    %c0_i32 = arith.constant 0 : i32
    %c0_i32_0 = arith.constant 0 : i32
    return %c0_i32 : i32
  }
  func.func @transform_4(%arg0: i32) -> i32 {
    %c0_i32 = arith.constant 0 : i32
    %c0_i32_0 = arith.constant 0 : i32
    return %c0_i32 : i32
  }
  func.func @transform_5(%arg0: i32) -> (i32, i32) {
    %c0_i32 = arith.constant 0 : i32
    %c0_i32_0 = arith.constant 0 : i32
    return %arg0, %c0_i32 : i32, i32
  }
}

</mosaic_0001>

<bundles_post_ra>
// kernel: net_forward.1
= control target key start
LH: loop header
LB: loop body
LE: loop exit
PB: predicated region body
PF: predicated region fallthrough
CT: control target
= control target key end

     0   :  { %11 = vsyncpa [#allocation4], 0  ;;  %s1190_s0 = inlined_call_operand.vmem [shape: bf16[6,16,128], index: 0, kind: input, shape index: {}]   ;;  %s1191_s1 = inlined_call_operand.vmem [shape: f32[6,10], index: 1, kind: input, shape index: {}]   ;;  %s1192_s2 = inlined_call_operand.vmem [shape: f32[10], index: 2, kind: input, shape index: {}]   ;;  %s1193_s3 = inlined_call_operand.vmem [shape: f32[10], index: 3, kind: input, shape index: {}]   ;;  %s1194_s4 = inlined_call_operand.<no memory space> [shape: f32[1], index: 4, kind: input, shape index: {}]   ;;  %s1195_s5 = inlined_call_operand.vmem [shape: f32[16,128], index: 5, kind: output, shape index: {}]  }
   0x1   :  { %12 = vsyncpa [#allocation6], 0  ;;  %s31_s20 = sshll.u32 %s1192_s2, 4  ;;  %s21_s23 = sshll.u32 %s1191_s1, 4  ;;  %s32_s20 = int_to_ptr.vmem [resolvable:$true] %s31_s20  ;;  %s22_s23 = int_to_ptr.vmem [resolvable:$true] %s21_s23 }
   0x2   :  { %s693_s24 = scalar_lea.vmem %s32_s20, 16  ;;  %p698_p1 = scmp.lt.s32.totalorder %s32_s20, %s32_s20 }
   0x3   :  { %p694_p0 = scmp.ne.s32.totalorder %s32_s20, %s693_s24  ;;  %p699_p2 = scmp.lt.s32.totalorder %s693_s24, %s693_s24 }
   0x5   :  { %p700_p3 = por %p699_p2, %p698_p1 }
   0x7   :  { %p701_p4 = pnand %p700_p3, %p694_p0 }
   0x9   :  { %704 = shalt.err (!%p701_p4)
}
   0xa   :  { %s733_s25 = smov [#allocation5]   ;;  %s705_s26 = scalar_lea.vmem %s22_s23, 128 }
   0xb   :  { %34 = dma.vmem_to_smem %s32_s20, 16, %s733_s25, [#allocation6]  }
   0xc   :  { %p706_p5 = scmp.ne.s32.totalorder %s22_s23, %s705_s26  ;;  %p710_p6 = scmp.lt.s32.totalorder %s22_s23, %s22_s23 }
   0xd   :  { %p711_p7 = scmp.lt.s32.totalorder %s705_s26, %s705_s26 }
   0xf   :  { %p712_p8 = por %p711_p7, %p710_p6 }
  0x11   :  { %p713_p9 = pnand %p712_p8, %p706_p5 }
  0x13   :  { %716 = shalt.err (!%p713_p9)
}
  0x14   :  { %s734_s2 = smov [#allocation3]   ;;  %s41_s28 = sshll.u32 %s1193_s3, 4  ;;  %s42_s28 = int_to_ptr.vmem [resolvable:$true] %s41_s28 }
  0x15   :  { %24 = dma.vmem_to_smem %s22_s23, 128, %s734_s2, [#allocation4]  }
  0x16   :  { %s717_s29 = scalar_lea.vmem %s42_s28, 16  ;;  %p722_p11 = scmp.lt.s32.totalorder %s42_s28, %s42_s28 }
  0x17   :  { %p718_p10 = scmp.ne.s32.totalorder %s42_s28, %s717_s29  ;;  %p723_p12 = scmp.lt.s32.totalorder %s717_s29, %s717_s29 }
  0x19   :  { %p724_p13 = por %p723_p12, %p722_p11 }
  0x1b   :  { %p725_p0 = pnand %p724_p13, %p718_p10 }
  0x1d   :  { %728 = shalt.err (!%p725_p0)
}
  0x1e   :  { %s735_s30 = smov [#allocation7]  }
  0x1f   :  { %44 = dma.vmem_to_smem %s42_s28, 16, %s735_s30, [#allocation6]  }
  0x20   :  { %729 = dma.done.wait [#allocation4], 128  }
  0x21   :  { %730 = vsyncadd [#allocation4], 4294967168 }
  0x22   :  { %731 = dma.done.wait [#allocation6], 32  }
  0x23   :  { %732 = vsyncadd [#allocation6], 4294967264 }
  0x24   :  { %56 = sfence }
  0x25   :  { %v654_v0 = vld [vmem:[%s1190_s0] sm:$0xff]   ;;  %s86_s3 = sld [smem:[#allocation3]]  ;;  %v677_v1 = vld [vmem:[%s1190_s0 + $0x8] sm:$0xff]   ;;  %v678_v2 = vld [vmem:[%s1190_s0 + $0x10] sm:$0xff]   ;;  %s817_s23 = sld [smem:[#allocation3 + $0x1]] }
  0x26   :  { %s576_s10 = sld [smem:[#allocation3 + $0x80]]  ;;  %v679_v3 = vld [vmem:[%s1190_s0 + $0x18] sm:$0xff]   ;;  %v791_v4 = vunpack.c.l.bf16 %v654_v0  ;;  %v793_v5 = vunpack.c.h.bf16 %v654_v0  ;;  %v680_v6 = vld [vmem:[%s1190_s0 + $0x20] sm:$0xff]   ;;  %v681_v7 = vld [vmem:[%s1190_s0 + $0x28] sm:$0xff]   ;;  %v805_v8 = vunpack.c.l.bf16 %v677_v1  ;;  %v807_v9 = vunpack.c.h.bf16 %v677_v1  ;;  %s819_s0 = sld [smem:[#allocation3 + $0x81]] }
  0x27   :  { %s787_s15 = sld [smem:[#allocation3 + $0x100]]  ;;  %v809_v10 = vunpack.c.l.bf16 %v678_v2  ;;  %v811_v11 = vunpack.c.h.bf16 %v678_v2  ;;  %v813_v12 = vunpack.c.l.bf16 %v679_v3  ;;  %v815_v13 = vunpack.c.h.bf16 %v679_v3  ;;  %s827_s24 = sld [smem:[#allocation3 + $0x101]] }
  0x28   :  { %s789_s16 = sld [smem:[#allocation3 + $0x180]]  ;;  %v821_v14 = vunpack.c.l.bf16 %v680_v6  ;;  %v823_v15 = vunpack.c.h.bf16 %v680_v6  ;;  %v825_v16 = vunpack.c.l.bf16 %v681_v7  ;;  %s829_s25 = sld [smem:[#allocation3 + $0x181]]  ;;  %v831_v18 = vunpack.c.h.bf16 %v681_v7 }
  0x29   :  { %s801_s21 = sld [smem:[#allocation3 + $0x200]]  ;;  %s843_s26 = sld [smem:[#allocation3 + $0x201]] }
  0x2a   :  { %s803_s22 = sld [smem:[#allocation3 + $0x280]]  ;;  %s845_s2 = sld [smem:[#allocation3 + $0x281]] }
  0x2b   :  { %v87_v17 = vstv %s86_s3  ;;  %s849_s1 = sld [smem:[#allocation5]]  ;;  %v131_v40 = vstv %s817_s23  ;;  %s859_s27 = sld [smem:[#allocation3 + $0x2]] }
  0x2c   :  { %v88_v19 = vmul.f32 %v791_v4, %v87_v17  ;;  %v89_v20 = vmul.f32 %v793_v5, %v87_v17  ;;  %v91_v21 = vstv %s576_s10  ;;  %v135_v41 = vstv %s819_s0  ;;  %s861_s28 = sld [smem:[#allocation3 + $0x82]]  ;;  %s865_s29 = sld [smem:[#allocation7]] }
  0x2d   :  { %v92_v22 = vmul.f32 %v805_v8, %v91_v21  ;;  %v93_v23 = vmul.f32 %v807_v9, %v91_v21  ;;  %v97_v24 = vstv %s787_s15  ;;  %v141_v42 = vstv %s827_s24  ;;  %s873_s30 = sld [smem:[#allocation3 + $0x102]]  ;;  %s879_s7 = sld [smem:[#allocation5 + $0x1]] }
  0x2e   :  { %v103_v25 = vstv %s789_s16  ;;  %v98_v26 = vmul.f32 %v809_v10, %v97_v24  ;;  %v99_v27 = vmul.f32 %v811_v11, %v97_v24  ;;  %v147_v43 = vstv %s829_s25  ;;  %s875_s6 = sld [smem:[#allocation3 + $0x182]]  ;;  %s889_s9 = sld [smem:[#allocation7 + $0x1]] }
  0x2f   :  { %v104_v28 = vmul.f32 %v813_v12, %v103_v25  ;;  %v105_v29 = vmul.f32 %v815_v13, %v103_v25  ;;  %v94_v30 = vadd.f32 %v92_v22, %v88_v19  ;;  %v95_v31 = vadd.f32 %v93_v23, %v89_v20  ;;  %s884_s3 = sld [smem:[#allocation3 + $0x202]]  ;;  %s898_s10 = sld [smem:[#allocation3 + $0x3]] }
  0x30   :  { %v109_v32 = vstv %s801_s21  ;;  %v115_v33 = vstv %s803_s22  ;;  %v132_v46 = vmul.f32 %v791_v4, %v131_v40  ;;  %v133_v47 = vmul.f32 %v793_v5, %v131_v40  ;;  %s886_s8 = sld [smem:[#allocation3 + $0x282]]  ;;  %s900_s11 = sld [smem:[#allocation3 + $0x83]] }
  0x31   :  { %v110_v34 = vmul.f32 %v821_v14, %v109_v32  ;;  %v111_v35 = vmul.f32 %v823_v15, %v109_v32  ;;  %v100_v36 = vadd.f32 %v98_v26, %v94_v30  ;;  %v101_v37 = vadd.f32 %v99_v27, %v95_v31  ;;  %s908_s12 = sld [smem:[#allocation5 + $0x2]]  ;;  %s914_s13 = sld [smem:[#allocation3 + $0x103]] }
  0x32   :  { %v116_v38 = vmul.f32 %v825_v16, %v115_v33  ;;  %v117_v39 = vmul.f32 %v831_v18, %v115_v33  ;;  %v136_v48 = vmul.f32 %v805_v8, %v135_v41  ;;  %v137_v49 = vmul.f32 %v807_v9, %v135_v41  ;;  %s916_s14 = sld [smem:[#allocation3 + $0x183]]  ;;  %s936_s17 = sld [smem:[#allocation7 + $0x2]] }
  0x33   :  { %v106_v44 = vadd.f32 %v104_v28, %v100_v36  ;;  %v107_v45 = vadd.f32 %v105_v29, %v101_v37  ;;  %v142_v50 = vmul.f32 %v809_v10, %v141_v42  ;;  %v143_v51 = vmul.f32 %v811_v11, %v141_v42  ;;  %s924_s15 = sld [smem:[#allocation3 + $0x203]]  ;;  %s943_s18 = sld [smem:[#allocation3 + $0x4]] }
  0x34   :  { %v148_v54 = vmul.f32 %v813_v12, %v147_v43  ;;  %v149_v55 = vmul.f32 %v815_v13, %v147_v43  ;;  %v138_v56 = vadd.f32 %v136_v48, %v132_v46  ;;  %v139_v57 = vadd.f32 %v137_v49, %v133_v47  ;;  %s926_s16 = sld [smem:[#allocation3 + $0x283]]  ;;  %s945_s19 = sld [smem:[#allocation3 + $0x84]] }
  0x35   :  { %v112_v52 = vadd.f32 %v110_v34, %v106_v44  ;;  %v113_v53 = vadd.f32 %v111_v35, %v107_v45  ;;  %v153_v58 = vstv %s843_s26  ;;  %v159_v59 = vstv %s845_s2  ;;  %s949_s20 = sld [smem:[#allocation5 + $0x3]]  ;;  %s953_s21 = sld [smem:[#allocation3 + $0x104]] }
  0x36   :  { %v121_v61 = vstv %s849_s1  ;;  %v144_v62 = vadd.f32 %v142_v50, %v138_v56  ;;  %v145_v63 = vadd.f32 %v143_v51, %v139_v57  ;;  %v154_v0 = vmul.f32 %v821_v14, %v153_v58  ;;  %s957_s22 = sld [smem:[#allocation3 + $0x184]]  ;;  %s972_s24 = sld [smem:[#allocation7 + $0x3]] }
  0x37   :  { %v118_v60 = vadd.f32 %v116_v38, %v112_v52  ;;  %v155_v1 = vmul.f32 %v823_v15, %v153_v58  ;;  %v119_v2 = vadd.f32 %v117_v39, %v113_v53  ;;  %v160_v3 = vmul.f32 %v825_v16, %v159_v59  ;;  %s959_s23 = sld [smem:[#allocation3 + $0x204]]  ;;  %s979_s25 = sld [smem:[#allocation3 + $0x5]] }
  0x38   :  { %v150_v6 = vadd.f32 %v148_v54, %v144_v62  ;;  %v151_v7 = vadd.f32 %v149_v55, %v145_v63  ;;  %v177_v17 = vstv %s859_s27  ;;  %v181_v19 = vstv %s861_s28  ;;  %s963_s0 = sld [smem:[#allocation3 + $0x284]]  ;;  %s981_s26 = sld [smem:[#allocation3 + $0x85]] }
  0x39   :  { %v122_v20 = vadd.f32 %v121_v61, %v118_v60  ;;  %v161_v21 = vmul.f32 %v831_v18, %v159_v59  ;;  %v178_v22 = vmul.f32 %v791_v4, %v177_v17  ;;  %v179_v23 = vmul.f32 %v793_v5, %v177_v17  ;;  %s985_s2 = sld [smem:[#allocation5 + $0x4]]  ;;  %s991_s1 = sld [smem:[#allocation3 + $0x105]] }
  0x3a   :  { %v156_v24 = vadd.f32 %v154_v0, %v150_v6  ;;  %v157_v25 = vadd.f32 %v155_v1, %v151_v7  ;;  %v182_v26 = vmul.f32 %v805_v8, %v181_v19  ;;  %v183_v27 = vmul.f32 %v807_v9, %v181_v19  ;;  %s993_s27 = sld [smem:[#allocation3 + $0x185]] }
  0x3b   :  { %v902_v28 = vadd.f32 %v121_v61, %v119_v2  ;;  %v127_v29 = vstv %s865_s29  ;;  %v187_v30 = vstv %s873_s30  ;;  %v193_v31 = vstv %s875_s6  ;;  %s996_s28 = sld [smem:[#allocation3 + $0x205]]  ;;  %s1009_s30 = sld [smem:[#allocation7 + $0x4]] }
  0x3c   :  { %v162_v32 = vadd.f32 %v160_v3, %v156_v24  ;;  %v165_v33 = vstv %s879_s7  ;;  %v184_v34 = vadd.f32 %v182_v26, %v178_v22  ;;  %v185_v35 = vadd.f32 %v183_v27, %v179_v23  ;;  %s998_s29 = sld [smem:[#allocation3 + $0x285]]  ;;  %s1016_s6 = sld [smem:[#allocation3 + $0x6]] }
  0x3d   :  { %v188_v36 = vmul.f32 %v809_v10, %v187_v30  ;;  %v189_v37 = vmul.f32 %v811_v11, %v187_v30  ;;  %v194_v38 = vmul.f32 %v813_v12, %v193_v31  ;;  %v195_v39 = vmul.f32 %v815_v13, %v193_v31  ;;  %s1018_s7 = sld [smem:[#allocation3 + $0x86]] }
  0x3e   :  { %v124_v40 = vmax.f32 %v122_v20, 0.0  ;;  %v163_v41 = vadd.f32 %v161_v21, %v157_v25  ;;  %v199_v42 = vstv %s884_s3  ;;  %v205_v43 = vstv %s886_s8  ;;  %s1026_s3 = sld [smem:[#allocation3 + $0x106]] }
  0x3f   :  { %v190_v44 = vadd.f32 %v188_v36, %v184_v34  ;;  %v191_v45 = vadd.f32 %v189_v37, %v185_v35  ;;  %v200_v46 = vmul.f32 %v821_v14, %v199_v42  ;;  %v201_v47 = vmul.f32 %v823_v15, %v199_v42  ;;  %s1028_s8 = sld [smem:[#allocation3 + $0x186]] }
  0x40   :  { %v125_v48 = vmax.f32 %v902_v28, 0.0  ;;  %v166_v49 = vadd.f32 %v165_v33, %v162_v32  ;;  %v171_v50 = vstv %s889_s9  ;;  %v206_v53 = vmul.f32 %v825_v16, %v205_v43  ;;  %s1034_s9 = sld [smem:[#allocation5 + $0x5]] }
  0x41   :  { %v196_v51 = vadd.f32 %v194_v38, %v190_v44  ;;  %v197_v52 = vadd.f32 %v195_v39, %v191_v45  ;;  %v207_v54 = vmul.f32 %v831_v18, %v205_v43  ;;  %v932_v55 = vmul.f32 %v127_v29, %v124_v40 }
  0x42   :  { %v167_v56 = vadd.f32 %v165_v33, %v163_v41  ;;  %v223_v57 = vstv %s898_s10  ;;  %v227_v58 = vstv %s900_s11  ;;  %v168_v63 = vmax.f32 %v166_v49, 0.0  ;;  %s1038_s10 = sld [smem:[#allocation3 + $0x206]] }
  0x43   :  { %v202_v59 = vadd.f32 %v200_v46, %v196_v51  ;;  %v203_v60 = vadd.f32 %v201_v47, %v197_v52  ;;  %v224_v61 = vmul.f32 %v791_v4, %v223_v57  ;;  %v225_v62 = vmul.f32 %v793_v5, %v223_v57  ;;  %s1040_s11 = sld [smem:[#allocation3 + $0x286]] }
  0x44   :  { %v211_v0 = vstv %s908_s12  ;;  %v228_v1 = vmul.f32 %v805_v8, %v227_v58  ;;  %v229_v2 = vmul.f32 %v807_v9, %v227_v58  ;;  %v233_v7 = vstv %s914_s13  ;;  %s1044_s12 = sld [smem:[#allocation7 + $0x5]]  ;;  %s1053_s13 = sld [smem:[#allocation3 + $0x7]] }
  0x45   :  { %v208_v3 = vadd.f32 %v206_v53, %v202_v59  ;;  %v209_v6 = vadd.f32 %v207_v54, %v203_v60  ;;  %v239_v17 = vstv %s916_s14  ;;  %v234_v21 = vmul.f32 %v809_v10, %v233_v7  ;;  %s1055_s14 = sld [smem:[#allocation3 + $0x87]] }
  0x46   :  { %v230_v19 = vadd.f32 %v228_v1, %v224_v61  ;;  %v231_v20 = vadd.f32 %v229_v2, %v225_v62  ;;  %v235_v22 = vmul.f32 %v811_v11, %v233_v7  ;;  %v169_v23 = vmax.f32 %v167_v56, 0.0 }
  0x47   :  { %v212_v24 = vadd.f32 %v211_v0, %v208_v3  ;;  %v240_v25 = vmul.f32 %v813_v12, %v239_v17  ;;  %v241_v26 = vmul.f32 %v815_v13, %v239_v17  ;;  %v245_v30 = vstv %s924_s15  ;;  %s1060_s15 = sld [smem:[#allocation5 + $0x6]] }
  0x48   :  { %v236_v27 = vadd.f32 %v234_v21, %v230_v19  ;;  %v237_v28 = vadd.f32 %v235_v22, %v231_v20  ;;  %v251_v31 = vstv %s926_s16  ;;  %v129_v32 = vmul.f32 %v127_v29, %v125_v48  ;;  %s1066_s16 = sld [smem:[#allocation3 + $0x107]] }
  0x49   :  { %v213_v33 = vadd.f32 %v211_v0, %v209_v6  ;;  %v246_v34 = vmul.f32 %v821_v14, %v245_v30  ;;  %v247_v35 = vmul.f32 %v823_v15, %v245_v30  ;;  %v252_v38 = vmul.f32 %v825_v16, %v251_v31 }
  0x4a   :  { %v242_v36 = vadd.f32 %v240_v25, %v236_v27  ;;  %v243_v37 = vadd.f32 %v241_v26, %v237_v28  ;;  %v253_v39 = vmul.f32 %v831_v18, %v251_v31  ;;  %v172_v40 = vmul.f32 %v171_v50, %v168_v63 }
  0x4b   :  { %v173_v41 = vmul.f32 %v171_v50, %v169_v23  ;;  %v214_v42 = vmax.f32 %v212_v24, 0.0  ;;  %v217_v43 = vstv %s936_s17  ;;  %v269_v29 = vstv %s943_s18  ;;  %s1068_s17 = sld [smem:[#allocation3 + $0x187]] }
  0x4c   :  { %v248_v44 = vadd.f32 %v246_v34, %v242_v36  ;;  %v249_v45 = vadd.f32 %v247_v35, %v243_v37  ;;  %v273_v46 = vstv %s945_s19  ;;  %v215_v47 = vmax.f32 %v213_v33, 0.0  ;;  %s1075_s18 = sld [smem:[#allocation3 + $0x207]] }
  0x4d   :  { %v257_v48 = vstv %s949_s20  ;;  %v270_v49 = vmul.f32 %v791_v4, %v269_v29  ;;  %v271_v51 = vmul.f32 %v793_v5, %v269_v29  ;;  %v274_v53 = vmul.f32 %v805_v8, %v273_v46  ;;  %s1077_s19 = sld [smem:[#allocation3 + $0x287]]  ;;  %s1085_s20 = sld [smem:[#allocation7 + $0x6]] }
  0x4e   :  { %v254_v50 = vadd.f32 %v252_v38, %v248_v44  ;;  %v255_v52 = vadd.f32 %v253_v39, %v249_v45  ;;  %v275_v54 = vmul.f32 %v807_v9, %v273_v46  ;;  %v174_v56 = vadd.f32 %v172_v40, %v932_v55 }
  0x4f   :  { %v279_v57 = vstv %s953_s21  ;;  %v285_v58 = vstv %s957_s22  ;;  %v291_v59 = vstv %s959_s23  ;;  %v276_v61 = vadd.f32 %v274_v53, %v270_v49  ;;  %s1092_s21 = sld [smem:[#allocation3 + $0x8]]  ;;  %s1098_s23 = sld [smem:[#allocation5 + $0x7]] }
  0x50   :  { %v258_v60 = vadd.f32 %v257_v48, %v254_v50  ;;  %v277_v62 = vadd.f32 %v275_v54, %v271_v51  ;;  %v297_v63 = vstv %s963_s0  ;;  %v280_v0 = vmul.f32 %v809_v10, %v279_v57  ;;  %s1094_s22 = sld [smem:[#allocation3 + $0x88]] }
  0x51   :  { %v281_v55 = vmul.f32 %v811_v11, %v279_v57  ;;  %v286_v1 = vmul.f32 %v813_v12, %v285_v58  ;;  %v287_v2 = vmul.f32 %v815_v13, %v285_v58  ;;  %v175_v3 = vadd.f32 %v173_v41, %v129_v32  ;;  %s1102_s0 = sld [smem:[#allocation3 + $0x108]] }
  0x52   :  { %v218_v6 = vmul.f32 %v217_v43, %v214_v42  ;;  %v219_v7 = vmul.f32 %v217_v43, %v215_v47  ;;  %v259_v17 = vadd.f32 %v257_v48, %v255_v52  ;;  %v282_v19 = vadd.f32 %v280_v0, %v276_v61 }
  0x53   :  { %v283_v20 = vadd.f32 %v281_v55, %v277_v62  ;;  %v292_v21 = vmul.f32 %v821_v14, %v291_v59  ;;  %v293_v22 = vmul.f32 %v823_v15, %v291_v59  ;;  %v260_v23 = vmax.f32 %v258_v60, 0.0 }
  0x54   :  { %v263_v24 = vstv %s972_s24  ;;  %v298_v25 = vmul.f32 %v825_v16, %v297_v63  ;;  %v299_v26 = vmul.f32 %v831_v18, %v297_v63  ;;  %v288_v27 = vadd.f32 %v286_v1, %v282_v19  ;;  %s1106_s24 = sld [smem:[#allocation3 + $0x188]] }
  0x55   :  { %v289_v28 = vadd.f32 %v287_v2, %v283_v20  ;;  %v315_v30 = vstv %s979_s25  ;;  %v319_v31 = vstv %s981_s26  ;;  %v261_v32 = vmax.f32 %v259_v17, 0.0  ;;  %s1108_s25 = sld [smem:[#allocation3 + $0x208]] }
  0x56   :  { %v303_v33 = vstv %s985_s2  ;;  %v316_v34 = vmul.f32 %v791_v4, %v315_v30  ;;  %v317_v35 = vmul.f32 %v793_v5, %v315_v30  ;;  %v294_v36 = vadd.f32 %v292_v21, %v288_v27  ;;  %s1112_s26 = sld [smem:[#allocation3 + $0x288]]  ;;  %s1119_s2 = sld [smem:[#allocation7 + $0x7]] }
  0x57   :  { %v295_v37 = vadd.f32 %v293_v22, %v289_v28  ;;  %v320_v38 = vmul.f32 %v805_v8, %v319_v31  ;;  %v321_v39 = vmul.f32 %v807_v9, %v319_v31  ;;  %v325_v40 = vstv %s991_s1  ;;  %s1126_s1 = sld [smem:[#allocation3 + $0x9]] }
  0x58   :  { %v331_v41 = vstv %s993_s27  ;;  %v337_v42 = vstv %s996_s28  ;;  %v343_v43 = vstv %s998_s29  ;;  %v300_v44 = vadd.f32 %v298_v25, %v294_v36  ;;  %s1128_s27 = sld [smem:[#allocation3 + $0x89]]  ;;  %s1132_s28 = sld [smem:[#allocation5 + $0x8]] }
  0x59   :  { %v301_v45 = vadd.f32 %v299_v26, %v295_v37  ;;  %v322_v29 = vadd.f32 %v320_v38, %v316_v34  ;;  %v323_v46 = vadd.f32 %v321_v39, %v317_v35  ;;  %v326_v47 = vmul.f32 %v809_v10, %v325_v40  ;;  %s1138_s29 = sld [smem:[#allocation3 + $0x109]] }
  0x5a   :  { %v327_v48 = vmul.f32 %v811_v11, %v325_v40  ;;  %v332_v49 = vmul.f32 %v813_v12, %v331_v41  ;;  %v333_v51 = vmul.f32 %v815_v13, %v331_v41  ;;  %v220_v50 = vadd.f32 %v218_v6, %v174_v56 }
  0x5b   :  { %v221_v52 = vadd.f32 %v219_v7, %v175_v3  ;;  %v264_v53 = vmul.f32 %v263_v24, %v260_v23  ;;  %v304_v54 = vadd.f32 %v303_v33, %v300_v44  ;;  %v328_v57 = vadd.f32 %v326_v47, %v322_v29 }
  0x5c   :  { %v329_v58 = vadd.f32 %v327_v48, %v323_v46  ;;  %v338_v59 = vmul.f32 %v821_v14, %v337_v42  ;;  %v339_v60 = vmul.f32 %v823_v15, %v337_v42  ;;  %v265_v61 = vmul.f32 %v263_v24, %v261_v32 }
  0x5d   :  { %v305_v62 = vadd.f32 %v303_v33, %v301_v45  ;;  %v309_v63 = vstv %s1009_s30  ;;  %v344_v56 = vmul.f32 %v825_v16, %v343_v43  ;;  %v334_v0 = vadd.f32 %v332_v49, %v328_v57  ;;  %s1140_s30 = sld [smem:[#allocation3 + $0x189]] }
  0x5e   :  { %v335_v55 = vadd.f32 %v333_v51, %v329_v58  ;;  %v361_v1 = vstv %s1016_s6  ;;  %v365_v2 = vstv %s1018_s7  ;;  %v306_v3 = vmax.f32 %v304_v54, 0.0  ;;  %s1143_s6 = sld [smem:[#allocation3 + $0x209]] }
  0x5f   :  { %v345_v6 = vmul.f32 %v831_v18, %v343_v43  ;;  %v362_v7 = vmul.f32 %v791_v4, %v361_v1  ;;  %v363_v17 = vmul.f32 %v793_v5, %v361_v1  ;;  %v340_v19 = vadd.f32 %v338_v59, %v334_v0  ;;  %s1145_s7 = sld [smem:[#allocation3 + $0x289]] }
  0x60   :  { %v341_v20 = vadd.f32 %v339_v60, %v335_v55  ;;  %v366_v21 = vmul.f32 %v805_v8, %v365_v2  ;;  %v367_v22 = vmul.f32 %v807_v9, %v365_v2  ;;  %v266_v23 = vadd.f32 %v264_v53, %v220_v50 }
  0x61   :  { %v307_v24 = vmax.f32 %v305_v62, 0.0  ;;  %v371_v25 = vstv %s1026_s3  ;;  %v377_v26 = vstv %s1028_s8  ;;  %v346_v27 = vadd.f32 %v344_v56, %v340_v19  ;;  %s1161_s3 = sld [smem:[#allocation7 + $0x8]]  ;;  %s1169_s8 = sld [smem:[#allocation5 + $0x9]] }
  0x62   :  { %v349_v28 = vstv %s1034_s9  ;;  %v368_v30 = vadd.f32 %v366_v21, %v362_v7  ;;  %v369_v31 = vadd.f32 %v367_v22, %v363_v17  ;;  %v372_v32 = vmul.f32 %v809_v10, %v371_v25  ;;  %s652_s9 = sld [smem:[#allocation7 + $0x9]] }
  0x63   :  { %v373_v33 = vmul.f32 %v811_v11, %v371_v25  ;;  %v378_v34 = vmul.f32 %v813_v12, %v377_v26  ;;  %v379_v35 = vmul.f32 %v815_v13, %v377_v26  ;;  %v310_v36 = vmul.f32 %v309_v63, %v306_v3 }
  0x64   :  { %v347_v37 = vadd.f32 %v345_v6, %v341_v20  ;;  %v383_v38 = vstv %s1038_s10  ;;  %v389_v39 = vstv %s1040_s11  ;;  %v374_v40 = vadd.f32 %v372_v32, %v368_v30 }
  0x65   :  { %v375_v41 = vadd.f32 %v373_v33, %v369_v31  ;;  %v384_v42 = vmul.f32 %v821_v14, %v383_v38  ;;  %v385_v43 = vmul.f32 %v823_v15, %v383_v38  ;;  %v267_v44 = vadd.f32 %v265_v61, %v221_v52 }
  0x66   :  { %v311_v45 = vmul.f32 %v309_v63, %v307_v24  ;;  %v350_v29 = vadd.f32 %v349_v28, %v346_v27  ;;  %v355_v46 = vstv %s1044_s12  ;;  %v380_v47 = vadd.f32 %v378_v34, %v374_v40 }
  0x67   :  { %v381_v48 = vadd.f32 %v379_v35, %v375_v41  ;;  %v390_v49 = vmul.f32 %v825_v16, %v389_v39  ;;  %v391_v51 = vmul.f32 %v831_v18, %v389_v39  ;;  %v1081_v50 = vadd.f32 %v310_v36, %v266_v23 }
  0x68   :  { %v351_v53 = vadd.f32 %v349_v28, %v347_v37  ;;  %v407_v54 = vstv %s1053_s13  ;;  %v411_v52 = vstv %s1055_s14  ;;  %v386_v57 = vadd.f32 %v384_v42, %v380_v47 }
  0x69   :  { %v387_v58 = vadd.f32 %v385_v43, %v381_v48  ;;  %v408_v59 = vmul.f32 %v791_v4, %v407_v54  ;;  %v409_v60 = vmul.f32 %v793_v5, %v407_v54  ;;  %v352_v61 = vmax.f32 %v350_v29, 0.0 }
  0x6a   :  { %v395_v62 = vstv %s1060_s15  ;;  %v412_v63 = vmul.f32 %v805_v8, %v411_v52  ;;  %v413_v56 = vmul.f32 %v807_v9, %v411_v52  ;;  %v392_v0 = vadd.f32 %v390_v49, %v386_v57 }
  0x6b   :  { %v393_v55 = vadd.f32 %v391_v51, %v387_v58  ;;  %v417_v1 = vstv %s1066_s16  ;;  %v423_v2 = vstv %s1068_s17  ;;  %v353_v19 = vmax.f32 %v351_v53, 0.0 }
  0x6c   :  { %v414_v3 = vadd.f32 %v412_v63, %v408_v59  ;;  %v415_v6 = vadd.f32 %v413_v56, %v409_v60  ;;  %v418_v7 = vmul.f32 %v809_v10, %v417_v1  ;;  %v419_v17 = vmul.f32 %v811_v11, %v417_v1 }
  0x6d   :  { %v396_v20 = vadd.f32 %v395_v62, %v392_v0  ;;  %v424_v21 = vmul.f32 %v813_v12, %v423_v2  ;;  %v425_v22 = vmul.f32 %v815_v13, %v423_v2  ;;  %v429_v25 = vstv %s1075_s18 }
  0x6e   :  { %v420_v23 = vadd.f32 %v418_v7, %v414_v3  ;;  %v421_v24 = vadd.f32 %v419_v17, %v415_v6  ;;  %v435_v26 = vstv %s1077_s19  ;;  %v313_v27 = vadd.f32 %v311_v45, %v267_v44 }
  0x6f   :  { %v397_v28 = vadd.f32 %v395_v62, %v393_v55  ;;  %v430_v30 = vmul.f32 %v821_v14, %v429_v25  ;;  %v431_v31 = vmul.f32 %v823_v15, %v429_v25  ;;  %v436_v34 = vmul.f32 %v825_v16, %v435_v26 }
  0x70   :  { %v426_v32 = vadd.f32 %v424_v21, %v420_v23  ;;  %v427_v33 = vadd.f32 %v425_v22, %v421_v24  ;;  %v437_v35 = vmul.f32 %v831_v18, %v435_v26  ;;  %v356_v36 = vmul.f32 %v355_v46, %v352_v61 }
  0x71   :  { %v357_v37 = vmul.f32 %v355_v46, %v353_v19  ;;  %v398_v38 = vmax.f32 %v396_v20, 0.0  ;;  %v401_v39 = vstv %s1085_s20  ;;  %v453_v42 = vstv %s1092_s21 }
  0x72   :  { %v432_v40 = vadd.f32 %v430_v30, %v426_v32  ;;  %v433_v41 = vadd.f32 %v431_v31, %v427_v33  ;;  %v457_v43 = vstv %s1094_s22  ;;  %v399_v44 = vmax.f32 %v397_v28, 0.0 }
  0x73   :  { %v441_v45 = vstv %s1098_s23  ;;  %v454_v29 = vmul.f32 %v791_v4, %v453_v42  ;;  %v455_v47 = vmul.f32 %v793_v5, %v453_v42  ;;  %v458_v49 = vmul.f32 %v805_v8, %v457_v43 }
  0x74   :  { %v438_v46 = vadd.f32 %v436_v34, %v432_v40  ;;  %v439_v48 = vadd.f32 %v437_v35, %v433_v41  ;;  %v459_v51 = vmul.f32 %v807_v9, %v457_v43  ;;  %v358_v53 = vadd.f32 %v356_v36, %v1081_v50 }
  0x75   :  { %v463_v54 = vstv %s1102_s0  ;;  %v469_v52 = vstv %s1106_s24  ;;  %v475_v57 = vstv %s1108_s25  ;;  %v460_v59 = vadd.f32 %v458_v49, %v454_v29 }
  0x76   :  { %v442_v58 = vadd.f32 %v441_v45, %v438_v46  ;;  %v461_v60 = vadd.f32 %v459_v51, %v455_v47  ;;  %v481_v61 = vstv %s1112_s26  ;;  %v464_v62 = vmul.f32 %v809_v10, %v463_v54 }
  0x77   :  { %v465_v50 = vmul.f32 %v811_v11, %v463_v54  ;;  %v470_v63 = vmul.f32 %v813_v12, %v469_v52  ;;  %v471_v56 = vmul.f32 %v815_v13, %v469_v52  ;;  %v359_v0 = vadd.f32 %v357_v37, %v313_v27 }
  0x78   :  { %v402_v55 = vmul.f32 %v401_v39, %v398_v38  ;;  %v403_v1 = vmul.f32 %v401_v39, %v399_v44  ;;  %v443_v2 = vadd.f32 %v441_v45, %v439_v48  ;;  %v466_v3 = vadd.f32 %v464_v62, %v460_v59 }
  0x79   :  { %v467_v6 = vadd.f32 %v465_v50, %v461_v60  ;;  %v476_v7 = vmul.f32 %v821_v14, %v475_v57  ;;  %v477_v17 = vmul.f32 %v823_v15, %v475_v57  ;;  %v444_v19 = vmax.f32 %v442_v58, 0.0 }
  0x7a   :  { %v447_v20 = vstv %s1119_s2  ;;  %v482_v21 = vmul.f32 %v825_v16, %v481_v61  ;;  %v483_v22 = vmul.f32 %v831_v18, %v481_v61  ;;  %v472_v23 = vadd.f32 %v470_v63, %v466_v3 }
  0x7b   :  { %v473_v24 = vadd.f32 %v471_v56, %v467_v6  ;;  %v499_v25 = vstv %s1126_s1  ;;  %v503_v26 = vstv %s1128_s27  ;;  %v445_v27 = vmax.f32 %v443_v2, 0.0 }
  0x7c   :  { %v487_v28 = vstv %s1132_s28  ;;  %v500_v30 = vmul.f32 %v791_v4, %v499_v25  ;;  %v501_v31 = vmul.f32 %v793_v5, %v499_v25  ;;  %v478_v32 = vadd.f32 %v476_v7, %v472_v23 }
  0x7d   :  { %v479_v33 = vadd.f32 %v477_v17, %v473_v24  ;;  %v504_v34 = vmul.f32 %v805_v8, %v503_v26  ;;  %v505_v35 = vmul.f32 %v807_v9, %v503_v26  ;;  %v509_v36 = vstv %s1138_s29 }
  0x7e   :  { %v515_v37 = vstv %s1140_s30  ;;  %v521_v38 = vstv %s1143_s6  ;;  %v527_v39 = vstv %s1145_s7  ;;  %v484_v40 = vadd.f32 %v482_v21, %v478_v32 }
  0x7f   :  { %v485_v41 = vadd.f32 %v483_v22, %v479_v33  ;;  %v506_v42 = vadd.f32 %v504_v34, %v500_v30  ;;  %v507_v43 = vadd.f32 %v505_v35, %v501_v31  ;;  %v510_v4 = vmul.f32 %v809_v10, %v509_v36 }
  0x80   :  { %v511_v5 = vmul.f32 %v811_v11, %v509_v36  ;;  %v516_v44 = vmul.f32 %v813_v12, %v515_v37  ;;  %v517_v8 = vmul.f32 %v815_v13, %v515_v37  ;;  %v404_v45 = vadd.f32 %v402_v55, %v358_v53 }
  0x81   :  { %v405_v9 = vadd.f32 %v403_v1, %v359_v0  ;;  %v488_v29 = vadd.f32 %v487_v28, %v484_v40  ;;  %v489_v47 = vadd.f32 %v487_v28, %v485_v41  ;;  %v512_v46 = vadd.f32 %v510_v4, %v506_v42 }
  0x82   :  { %v513_v48 = vadd.f32 %v511_v5, %v507_v43  ;;  %v522_v49 = vmul.f32 %v821_v14, %v521_v38  ;;  %v523_v51 = vmul.f32 %v823_v15, %v521_v38  ;;  %v448_v54 = vmul.f32 %v447_v20, %v444_v19 }
  0x83   :  { %v449_v10 = vmul.f32 %v447_v20, %v445_v27  ;;  %v528_v11 = vmul.f32 %v825_v16, %v527_v39  ;;  %v529_v12 = vmul.f32 %v831_v18, %v527_v39  ;;  %v490_v13 = vmax.f32 %v488_v29, 0.0 }
  0x84   :  { %v491_v53 = vmax.f32 %v489_v47, 0.0  ;;  %v518_v52 = vadd.f32 %v516_v44, %v512_v46  ;;  %v519_v57 = vadd.f32 %v517_v8, %v513_v48  ;;  %v493_v58 = vstv %s1161_s3 }
  0x85   :  { %v450_v61 = vadd.f32 %v448_v54, %v404_v45  ;;  %v451_v62 = vadd.f32 %v449_v10, %v405_v9  ;;  %v533_v14 = vstv %s1169_s8  ;;  %v494_v50 = vmul.f32 %v493_v58, %v490_v13 }
  0x86   :  { %v524_v59 = vadd.f32 %v522_v49, %v518_v52  ;;  %v525_v60 = vadd.f32 %v523_v51, %v519_v57  ;;  %v495_v63 = vmul.f32 %v493_v58, %v491_v53  ;;  %v539_v16 = vstv %s652_s9 }
  0x87   :  { %v496_v1 = vadd.f32 %v494_v50, %v450_v61  ;;  %v545_v17 = vstv %s1194_s4 }
  0x88   :  { %v530_v15 = vadd.f32 %v528_v11, %v524_v59  ;;  %v531_v56 = vadd.f32 %v529_v12, %v525_v60  ;;  %v497_v18 = vadd.f32 %v495_v63, %v451_v62 }
  0x8a   :  { %v534_v0 = vadd.f32 %v533_v14, %v530_v15  ;;  %v535_v55 = vadd.f32 %v533_v14, %v531_v56 }
  0x8c   :  { %v536_v2 = vmax.f32 %v534_v0, 0.0  ;;  %v537_v3 = vmax.f32 %v535_v55, 0.0 }
  0x8e   :  { %v540_v6 = vmul.f32 %v539_v16, %v536_v2  ;;  %v541_v7 = vmul.f32 %v539_v16, %v537_v3 }
  0x90   :  { %v542_v19 = vadd.f32 %v540_v6, %v496_v1  ;;  %v543_v20 = vadd.f32 %v541_v7, %v497_v18 }
  0x92   :  { %v546_v21 = vadd.f32 %v545_v17, %v542_v19  ;;  %v547_v22 = vadd.f32 %v545_v17, %v543_v20 }
  0x94   :  { %v548_v23 = vsub.f32 0.0, %v546_v21  ;;  %v549_v24 = vsub.f32 0.0, %v547_v22 }
  0x96   :  { %v550_v25 = vmul.f32 1.442695, %v548_v23  ;;  %v552_v26 = vmul.f32 1.442695, %v549_v24 }
  0x98   :  { %685 = vpow2.f32 %v550_v25 }
  0x99   :  { %687 = vpow2.f32 %v552_v26 }
  0xa2   :  { %v686_v27 = vpop.eup %685 }
  0xa3   :  { %v688_v28 = vpop.eup %687  ;;  %v554_v30 = vadd.f32 1.0, %v686_v27 }
  0xa4   :  { %v555_v31 = vadd.f32 1.0, %v688_v28 }
  0xa5   :  { %689 = vrcp.f32 %v554_v30 }
  0xa6   :  { %691 = vrcp.f32 %v555_v31 }
  0xaf   :  { %v690_v32 = vpop.eup %689 }
  0xb0   :  { %v692_v33 = vpop.eup %691  ;;  %558 = vst [vmem:[%s1195_s5] sm:$0xff] %v690_v32 }
  0xb1   :  { %559 = vst [vmem:[%s1195_s5 + $0x8] sm:$0xff] %v692_v33 }
  0xb2   :  { %564 = vsyncpa [#allocation4], 1 }
  0xb3   :  { %565 = vsyncpa [#allocation6], 1 }

</bundles_post_ra>
